<compile_context>
chip_gen: v7x
topology: tpu7x:2x2x1
jax: 0.10.0
libtpu: 0.0.40
codegen_flags: <defaults>
</compile_context>

<pallas_src>
import math

import jax
import jax.numpy as jnp
from jax.experimental import pallas as pl
from jax.experimental.pallas import tpu as pltpu


def _attention_kernel(alpha_ref, q_ref, k_ref, v_ref, mask_ref, probs_ref,
                      o_ref, p_ref):
    # One (batch, q_tile) step, all heads at once.
    q = q_ref[0]            # (H, tq, D), native dtype
    k = k_ref[0]            # (H, T,  D), native dtype
    v = v_ref[0]            # (H, T,  D), native dtype
    mask = mask_ref[0]      # (tq, T)
    probs = probs_ref[0]    # (tq, T)
    alpha = alpha_ref[0]    # scalar (SMEM), f32

    d_k = q.shape[-1]
    # Fold 1/sqrt(d_k) into q: H*tq*D multiplies instead of H*tq*T, and keeps
    # the matmul operands in the native (possibly bf16) dtype for the MXU.
    scale = jnp.asarray(1.0 / math.sqrt(d_k), dtype=q.dtype)
    q_scaled = q * scale

    # attn_score = (q / sqrt(d_k)) @ k^T   -- batched over heads, f32 accumulate.
    scores = jnp.einsum("htd,hsd->hts", q_scaled, k,
                        preferred_element_type=jnp.float32)   # (H, tq, T)

    # += probs * alpha  (broadcast over heads), then masked_fill(mask == 0, -inf)
    bias = probs.astype(jnp.float32) * alpha                   # (tq, T)
    scores = scores + bias[None, :, :]
    scores = jnp.where((mask == 0)[None, :, :], -jnp.inf, scores)

    # Numerically stable softmax along the key axis.
    row_max = jnp.max(scores, axis=-1, keepdims=True)
    exps = jnp.exp(scores - row_max)
    denom = jnp.sum(exps, axis=-1, keepdims=True)
    attn_p = exps * pl.reciprocal(denom, approx=True)          # EUP reciprocal

    p_ref[0] = attn_p.astype(p_ref.dtype)
    # attention = attn_p @ v -- cast attn_p to v's dtype so bf16 inputs use the
    # native MXU path; accumulate in f32.
    o_ref[0] = jnp.einsum("hts,hsd->htd", attn_p.astype(v.dtype), v,
                          preferred_element_type=jnp.float32).astype(o_ref.dtype)


def _choose_q_tile(T, H):
    """Pick a query-tile length dividing T; prefer MXU-aligned tiles, bound the
    per-step f32 score block (H, tq, T) to ~8 MiB of VMEM."""
    budget = 8 * 1024 * 1024
    for tq in (256, 128, 64, 32, 16, 8):
        if T % tq == 0 and H * tq * T * 4 <= budget:
            return tq
    return T


def attention_pallas(q, k, v, mask, probs, alpha):
    """q,k,v: (B,H,T,D); mask,probs: (B,T,T); alpha: scalar.

    Returns (attention (B,H,T,D), attn_p (B,H,T,T)) in q.dtype, matching the
    torch module's forward (eval mode, dropout = no-op).
    """
    B, H, T, D = q.shape
    out_dtype = q.dtype
    tq = _choose_q_tile(T, H)
    num_q = T // tq

    alpha_arr = jnp.asarray(alpha, dtype=jnp.float32).reshape((1,))

    grid = (B, num_q)
    q_spec = pl.BlockSpec((1, H, tq, D), lambda b, qi: (b, 0, qi, 0))
    # k/v block index is constant across the inner q-tile axis -> not re-DMA'd.
    kv_spec = pl.BlockSpec((1, H, T, D), lambda b, qi: (b, 0, 0, 0))
    bt_spec = pl.BlockSpec((1, tq, T), lambda b, qi: (b, qi, 0))

    out_shapes = (
        jax.ShapeDtypeStruct((B, H, T, D), out_dtype),
        jax.ShapeDtypeStruct((B, H, T, T), out_dtype),
    )
    out_specs = (
        pl.BlockSpec((1, H, tq, D), lambda b, qi: (b, 0, qi, 0)),
        pl.BlockSpec((1, H, tq, T), lambda b, qi: (b, 0, qi, 0)),
    )

    return pl.pallas_call(
        _attention_kernel,
        out_shape=out_shapes,
        grid=grid,
        in_specs=[
            pl.BlockSpec(memory_space=pltpu.MemorySpace.SMEM),  # alpha scalar
            q_spec,   # q
            kv_spec,  # k
            kv_spec,  # v
            bt_spec,  # mask (any dtype; 0 == masked)
            bt_spec,  # probs
        ],
        out_specs=out_specs,
        compiler_params=pltpu.CompilerParams(
            dimension_semantics=("parallel", "parallel"),
            vmem_limit_bytes=64 * 1024 * 1024),
    )(alpha_arr, q, k, v, mask, probs)


def attention_reference(q, k, v, mask, probs, alpha):
    """Pure-JAX (f32) reference mirroring the PyTorch forward."""
    d_k = k.shape[-1]
    qf, kf, vf = (x.astype(jnp.float32) for x in (q, k, v))
    scores = jnp.matmul(qf, jnp.swapaxes(kf, -1, -2)) / math.sqrt(d_k)
    scores = scores + probs[:, None, :, :].astype(jnp.float32) * alpha
    scores = jnp.where(mask[:, None, :, :] == 0, -jnp.inf, scores)
    attn_p = jax.nn.softmax(scores, axis=-1)
    attention = jnp.matmul(attn_p, vf)
    return attention, attn_p


if __name__ == "__main__":
    key = jax.random.PRNGKey(0)
    kq, kk, kv, kp, km = jax.random.split(key, 5)

    B, H, T, D = 2, 4, 8, 32
    q = jax.random.normal(kq, (B, H, T, D), dtype=jnp.float32)
    k = jax.random.normal(kk, (B, H, T, D), dtype=jnp.float32)
    v = jax.random.normal(kv, (B, H, T, D), dtype=jnp.float32)
    probs = jax.random.uniform(kp, (B, T, T), dtype=jnp.float32)
    # mask: 0 marks masked positions; keep the diagonal unmasked so no row is
    # fully masked (fully-masked rows produce NaN in both torch and here).
    mask = (jax.random.uniform(km, (B, T, T)) > 0.2).astype(jnp.float32)
    mask = jnp.maximum(mask, jnp.eye(T, dtype=jnp.float32)[None])
    # Parameter init as in the module: alpha = 1.0
    alpha = jnp.float32(1.0)

    # --- float32 inputs (tight check; tolerance covers the approx reciprocal) ---
    out, attn_p = attention_pallas(q, k, v, mask, probs, alpha)
    jax.block_until_ready((out, attn_p))
    ref_out, ref_p = attention_reference(q, k, v, mask, probs, alpha)
    assert jnp.allclose(out, ref_out, atol=2e-3, rtol=2e-3)
    assert jnp.allclose(attn_p, ref_p, atol=2e-3, rtol=2e-3)

    # --- bfloat16 inputs (native MXU fast path; looser tolerance vs f32 ref) ---
    qb, kb, vb = (x.astype(jnp.bfloat16) for x in (q, k, v))
    out_b, p_b = attention_pallas(qb, kb, vb, mask, probs, alpha)
    jax.block_until_ready((out_b, p_b))
    ref_out_b, ref_p_b = attention_reference(qb, kb, vb, mask, probs, alpha)
    assert jnp.allclose(out_b.astype(jnp.float32), ref_out_b, atol=5e-2, rtol=5e-2)
    assert jnp.allclose(p_b.astype(jnp.float32), ref_p_b, atol=5e-2, rtol=5e-2)

    print("KERNEL_OK")
</pallas_src>

<mosaic_0001>
module attributes {stable_mosaic.version = 11 : i64} {
  func.func @_attention_kernel(%arg0: i32, %arg1: i32, %arg2: memref<1xf32, #tpu.memory_space<smem>>, %arg3: memref<1x4x8x32xf32, #tpu.memory_space<vmem>>, %arg4: memref<1x4x8x32xf32, #tpu.memory_space<vmem>>, %arg5: memref<1x4x8x32xf32, #tpu.memory_space<vmem>>, %arg6: memref<1x8x8xf32, #tpu.memory_space<vmem>>, %arg7: memref<1x8x8xf32, #tpu.memory_space<vmem>>, %arg8: memref<1x4x8x32xf32, #tpu.memory_space<vmem>>, %arg9: memref<1x4x8x8xf32, #tpu.memory_space<vmem>>) attributes {dimension_semantics = [#tpu.dimension_semantics<parallel>, #tpu.dimension_semantics<parallel>], iteration_bounds = array<i64: 2, 1>, scalar_prefetch = 0 : i64, scratch_operands = 0 : i64, tpu.core_type = #tpu.core_type<tc>, window_params = [{transform_indices = @transform_0, window_bounds = array<i64: 1>}, {transform_indices = @transform_1, window_bounds = array<i64: 1, 4, 8, 32>}, {transform_indices = @transform_2, window_bounds = array<i64: 1, 4, 8, 32>}, {transform_indices = @transform_3, window_bounds = array<i64: 1, 4, 8, 32>}, {transform_indices = @transform_4, window_bounds = array<i64: 1, 8, 8>}, {transform_indices = @transform_5, window_bounds = array<i64: 1, 8, 8>}, {transform_indices = @transform_6, window_bounds = array<i64: 1, 4, 8, 32>}, {transform_indices = @transform_7, window_bounds = array<i64: 1, 4, 8, 8>}]} {
    %c0 = arith.constant 0 : index
    %c0_0 = arith.constant 0 : index
    %c0_1 = arith.constant 0 : index
    %c0_2 = arith.constant 0 : index
    %0 = vector.load %arg3[%c0, %c0_0, %c0_1, %c0_2] : memref<1x4x8x32xf32, #tpu.memory_space<vmem>>, vector<1x4x8x32xf32>
    %1 = vector.shape_cast %0 : vector<1x4x8x32xf32> to vector<4x8x32xf32>
    %c0_3 = arith.constant 0 : index
    %c0_4 = arith.constant 0 : index
    %c0_5 = arith.constant 0 : index
    %c0_6 = arith.constant 0 : index
    %2 = vector.load %arg4[%c0_3, %c0_4, %c0_5, %c0_6] : memref<1x4x8x32xf32, #tpu.memory_space<vmem>>, vector<1x4x8x32xf32>
    %3 = vector.shape_cast %2 : vector<1x4x8x32xf32> to vector<4x8x32xf32>
    %c0_7 = arith.constant 0 : index
    %c0_8 = arith.constant 0 : index
    %c0_9 = arith.constant 0 : index
    %c0_10 = arith.constant 0 : index
    %4 = vector.load %arg5[%c0_7, %c0_8, %c0_9, %c0_10] : memref<1x4x8x32xf32, #tpu.memory_space<vmem>>, vector<1x4x8x32xf32>
    %5 = vector.shape_cast %4 : vector<1x4x8x32xf32> to vector<4x8x32xf32>
    %c0_11 = arith.constant 0 : index
    %c0_12 = arith.constant 0 : index
    %c0_13 = arith.constant 0 : index
    %6 = vector.load %arg6[%c0_11, %c0_12, %c0_13] : memref<1x8x8xf32, #tpu.memory_space<vmem>>, vector<1x8x8xf32>
    %7 = vector.shape_cast %6 : vector<1x8x8xf32> to vector<8x8xf32>
    %c0_14 = arith.constant 0 : index
    %c0_15 = arith.constant 0 : index
    %c0_16 = arith.constant 0 : index
    %8 = vector.load %arg7[%c0_14, %c0_15, %c0_16] : memref<1x8x8xf32, #tpu.memory_space<vmem>>, vector<1x8x8xf32>
    %9 = vector.shape_cast %8 : vector<1x8x8xf32> to vector<8x8xf32>
    %c0_17 = arith.constant 0 : index
    %10 = memref.load %arg2[%c0_17] : memref<1xf32, #tpu.memory_space<smem>>
    %cst = arith.constant 0.176776692 : f32
    %11 = vector.broadcast %cst : f32 to vector<4x8x32xf32>
    %12 = arith.mulf %1, %11 : vector<4x8x32xf32>
    "tpu.trace_start"() <{level = 10 : i32, message = "htd,hsd->hts"}> : () -> ()
    %cst_18 = arith.constant dense<0.000000e+00> : vector<4x8x8xf32>
    %13 = tpu.matmul %12, %3, %cst_18 {dimension_numbers = #tpu.dot_dimension_numbers<[2], [2], [1], [1], [0, 0, 0, 1, 1, 1], [0], [0]>} : vector<4x8x32xf32>, vector<4x8x32xf32>, vector<4x8x8xf32> -> vector<4x8x8xf32>
    "tpu.trace_stop"() : () -> ()
    %14 = vector.broadcast %10 : f32 to vector<8x8xf32>
    %15 = arith.mulf %9, %14 : vector<8x8xf32>
    %16 = vector.shape_cast %15 : vector<8x8xf32> to vector<1x8x8xf32>
    %17 = vector.broadcast %16 : vector<1x8x8xf32> to vector<4x8x8xf32>
    %18 = arith.addf %13, %17 : vector<4x8x8xf32>
    %cst_19 = arith.constant 0.000000e+00 : f32
    %19 = vector.broadcast %cst_19 : f32 to vector<8x8xf32>
    %20 = arith.cmpf oeq, %7, %19 : vector<8x8xf32>
    %21 = vector.shape_cast %20 : vector<8x8xi1> to vector<1x8x8xi1>
    %cst_20 = arith.constant 0xFF800000 : f32
    %22 = vector.shape_cast %21 : vector<1x8x8xi1> to vector<1x8x8xi1>
    %23 = vector.broadcast %22 : vector<1x8x8xi1> to vector<4x8x8xi1>
    %24 = vector.broadcast %cst_20 : f32 to vector<4x8x8xf32>
    %25 = arith.select %23, %24, %18 : vector<4x8x8xi1>, vector<4x8x8xf32>
    %cst_21 = arith.constant dense<0xFF800000> : vector<4x8xf32>
    %26 = vector.multi_reduction <maximumf>, %25, %cst_21 [2] : vector<4x8x8xf32> to vector<4x8xf32>
    %27 = vector.shape_cast %26 : vector<4x8xf32> to vector<4x8x1xf32>
    %28 = vector.broadcast %27 : vector<4x8x1xf32> to vector<4x8x8xf32>
    %29 = arith.subf %25, %28 : vector<4x8x8xf32>
    %30 = math.exp %29 : vector<4x8x8xf32>
    %cst_22 = arith.constant dense<0.000000e+00> : vector<4x8xf32>
    %31 = vector.multi_reduction <add>, %30, %cst_22 [2] : vector<4x8x8xf32> to vector<4x8xf32>
    %32 = vector.shape_cast %31 : vector<4x8xf32> to vector<4x8x1xf32>
    %33 = tpu.reciprocal %32 {approx = true} : vector<4x8x1xf32> -> vector<4x8x1xf32>
    %34 = vector.broadcast %33 : vector<4x8x1xf32> to vector<4x8x8xf32>
    %35 = arith.mulf %30, %34 : vector<4x8x8xf32>
    %c0_23 = arith.constant 0 : index
    %c0_24 = arith.constant 0 : index
    %c0_25 = arith.constant 0 : index
    %c0_26 = arith.constant 0 : index
    %36 = vector.load %arg9[%c0_23, %c0_24, %c0_25, %c0_26] : memref<1x4x8x8xf32, #tpu.memory_space<vmem>>, vector<1x4x8x8xf32>
    %37 = vector.shape_cast %36 : vector<1x4x8x8xf32> to vector<4x8x8xf32>
    %38 = vector.shape_cast %35 : vector<4x8x8xf32> to vector<1x4x8x8xf32>
    tpu.vector_store %arg9[%c0_23, %c0_24, %c0_25, %c0_26], %38 {strides = array<i32>} : memref<1x4x8x8xf32, #tpu.memory_space<vmem>>, vector<1x4x8x8xf32>,
    "tpu.trace_start"() <{level = 10 : i32, message = "hts,hsd->htd"}> : () -> ()
    %cst_27 = arith.constant dense<0.000000e+00> : vector<4x8x32xf32>
    %39 = tpu.matmul %35, %5, %cst_27 {dimension_numbers = #tpu.dot_dimension_numbers<[2], [1], [1], [2], [0, 0, 0, 1, 1, 2], [0], [0]>} : vector<4x8x8xf32>, vector<4x8x32xf32>, vector<4x8x32xf32> -> vector<4x8x32xf32>
    "tpu.trace_stop"() : () -> ()
    %c0_28 = arith.constant 0 : index
    %c0_29 = arith.constant 0 : index
    %c0_30 = arith.constant 0 : index
    %c0_31 = arith.constant 0 : index
    %40 = vector.load %arg8[%c0_28, %c0_29, %c0_30, %c0_31] : memref<1x4x8x32xf32, #tpu.memory_space<vmem>>, vector<1x4x8x32xf32>
    %41 = vector.shape_cast %40 : vector<1x4x8x32xf32> to vector<4x8x32xf32>
    %42 = vector.shape_cast %39 : vector<4x8x32xf32> to vector<1x4x8x32xf32>
    tpu.vector_store %arg8[%c0_28, %c0_29, %c0_30, %c0_31], %42 {strides = array<i32>} : memref<1x4x8x32xf32, #tpu.memory_space<vmem>>, vector<1x4x8x32xf32>,
    return
  }
  func.func @transform_0(%arg0: i32, %arg1: i32) -> i32 {
    %c0_i32 = arith.constant 0 : i32
    %c0_i32_0 = arith.constant 0 : i32
    return %c0_i32 : i32
  }
  func.func @transform_1(%arg0: i32, %arg1: i32) -> (i32, i32, i32, i32) {
    %c0_i32 = arith.constant 0 : i32
    %c0_i32_0 = arith.constant 0 : i32
    %c0_i32_1 = arith.constant 0 : i32
    return %arg0, %c0_i32, %arg1, %c0_i32_0 : i32, i32, i32, i32
  }
  func.func @transform_2(%arg0: i32, %arg1: i32) -> (i32, i32, i32, i32) {
    %c0_i32 = arith.constant 0 : i32
    %c0_i32_0 = arith.constant 0 : i32
    %c0_i32_1 = arith.constant 0 : i32
    %c0_i32_2 = arith.constant 0 : i32
    return %arg0, %c0_i32, %c0_i32_0, %c0_i32_1 : i32, i32, i32, i32
  }
  func.func @transform_3(%arg0: i32, %arg1: i32) -> (i32, i32, i32, i32) {
    %c0_i32 = arith.constant 0 : i32
    %c0_i32_0 = arith.constant 0 : i32
    %c0_i32_1 = arith.constant 0 : i32
    %c0_i32_2 = arith.constant 0 : i32
    return %arg0, %c0_i32, %c0_i32_0, %c0_i32_1 : i32, i32, i32, i32
  }
  func.func @transform_4(%arg0: i32, %arg1: i32) -> (i32, i32, i32) {
    %c0_i32 = arith.constant 0 : i32
    %c0_i32_0 = arith.constant 0 : i32
    return %arg0, %arg1, %c0_i32 : i32, i32, i32
  }
  func.func @transform_5(%arg0: i32, %arg1: i32) -> (i32, i32, i32) {
    %c0_i32 = arith.constant 0 : i32
    %c0_i32_0 = arith.constant 0 : i32
    return %arg0, %arg1, %c0_i32 : i32, i32, i32
  }
  func.func @transform_6(%arg0: i32, %arg1: i32) -> (i32, i32, i32, i32) {
    %c0_i32 = arith.constant 0 : i32
    %c0_i32_0 = arith.constant 0 : i32
    %c0_i32_1 = arith.constant 0 : i32
    return %arg0, %c0_i32, %arg1, %c0_i32_0 : i32, i32, i32, i32
  }
  func.func @transform_7(%arg0: i32, %arg1: i32) -> (i32, i32, i32, i32) {
    %c0_i32 = arith.constant 0 : i32
    %c0_i32_0 = arith.constant 0 : i32
    %c0_i32_1 = arith.constant 0 : i32
    return %arg0, %c0_i32, %arg1, %c0_i32_0 : i32, i32, i32, i32
  }
}

</mosaic_0001>

<bundles_post_ra>
// kernel: tpu_custom_call.1
= control target key start
LH: loop header
LB: loop body
LE: loop exit
PB: predicated region body
PF: predicated region fallthrough
CT: control target
= control target key end

     0   :  { %s2423_s0 = inlined_call_operand.<no memory space> [shape: f32[1], index: 0, kind: input, shape index: {}]   ;;  %s2424_s1 = inlined_call_operand.hbm [shape: f32[2,4,8,32], index: 1, kind: input, shape index: {}]   ;;  %s2425_s2 = inlined_call_operand.hbm [shape: f32[2,4,8,32], index: 2, kind: input, shape index: {}]   ;;  %s2426_s3 = inlined_call_operand.hbm [shape: f32[2,4,8,32], index: 3, kind: input, shape index: {}]   ;;  %s2427_s4 = inlined_call_operand.hbm [shape: f32[2,8,8], index: 4, kind: input, shape index: {}]   ;;  %s2428_s5 = inlined_call_operand.hbm [shape: f32[2,8,8], index: 5, kind: input, shape index: {}]   ;;  %s2429_s6 = inlined_call_operand.hbm [shape: f32[2,4,8,32], index: 6, kind: output, shape index: {0}]   ;;  %s2430_s7 = inlined_call_operand.hbm [shape: f32[2,4,8,8], index: 7, kind: output, shape index: {1}]  }
   0x1   :  { %2447 = sst [smem:[#allocation26_spill]] %s2424_s1 }
   0x2   :  { %2448 = sst [smem:[#allocation27_spill]] %s2425_s2 }
   0x3   :  { %2449 = sst [smem:[#allocation28_spill]] %s2427_s4 }
   0x4   :  { %2450 = sst [smem:[#allocation29_spill]] %s2429_s6 }
   0x5   :  { %2451 = sst [smem:[#allocation30_spill]] %s2430_s7 }
   0x6   :  { %13 = sst [smem:[#allocation2]] %s2423_s0 }
   0x7   :  { %14 = vsyncpa [#allocation4], 0 }
   0x8   :  { %16 = vsyncpa [#allocation4 + $0x1], 0 }
   0x9   :  { %17 = vsyncpa [#allocation7], 0 }
   0xa   :  { %19 = vsyncpa [#allocation7 + $0x1], 0 }
   0xb   :  { %20 = vsyncpa [#allocation10], 0 }
   0xc   :  { %22 = vsyncpa [#allocation10 + $0x1], 0 }
   0xd   :  { %23 = vsyncpa [#allocation5], 0 }
   0xe   :  { %25 = vsyncpa [#allocation5 + $0x1], 0 }
   0xf   :  { %26 = vsyncpa [#allocation14], 0 }
  0x10   :  { %28 = vsyncpa [#allocation14 + $0x1], 0  ;;  %s1949_s26 = smov 0   ;;  %s1951_s27 = smov 0  }
  0x11   :  { %s1953_s28 = smov 0   ;;  %s1955_s29 = smov 0  }
  0x12   :  { %s1957_s30 = smov 0   ;;  %s1959_s0 = smov 0  }
  0x13 LB: > { %2452 = sst [smem:[#allocation20_spill]] %s1871_s26  ;;  %s1980_s8 = sadd.s32 4294967295, %s1891_s0   ;;  %s1891_s0 = sphi %s1959_s0, %s34_s0   ;;  %s1887_s30 = sphi %s1957_s30, %s2487_s30   ;;  %s1883_s29 = sphi %s1955_s29, %s2486_s29   ;;  %s1879_s28 = sphi %s1953_s28, %s2485_s28   ;;  %s1875_s27 = sphi %s1951_s27, %s2489_s27   ;;  %s1871_s26 = sphi %s1949_s26, %s2488_s26  }
  0x14   : > { %2453 = sst [smem:[#allocation21_spill]] %s1879_s28  ;;  %s1405_s9 = sadd.s32 4294967294, %s1891_s0  }
  0x15   : > { %2454 = sst [smem:[#allocation22_spill]] %s1887_s30  ;;  %s46_s10 = sadd.s32 1, %s1887_s30 }
  0x16   : > { %s76_s11 = sadd.s32 1, %s1879_s28  ;;  %p48_p0 = scmp.ge.s32.totalorder %s46_s10, 2 }
  0x17   : > { %p83_p1 = scmp.ne.s32.totalorder %s1879_s28, %s1875_s27  ;;  %p84_p2 = scmp.eq.s32.totalorder %s1891_s0, 0 }
  0x18   : > { %p89_p3 = scmp.ne.s32.totalorder %s1875_s27, %s1871_s26  ;;  %s2491_s10 = smov (%p48_p0, %s46_s10), 0 }
  0x19   : > { %2455 = sst [smem:[#allocation23_spill]] %s2491_s10  ;;  %p1992_p4 = por %p84_p2, %p83_p1 }
  0x1a   : > { %p90_p5 = scmp.eq.s32.totalorder %s1980_s8, 0  ;;  %s71_s13 = ssub.s32 %s1887_s30, %s2491_s10 }
  0x1b   : > { %p223_p6 = scmp.eq.s32.totalorder %s1980_s8, 1  ;;  %p74_p7 = scmp.eq.s32.totalorder %s71_s13, 0 }
  0x1c   : > { %p2000_p8 = por %p90_p5, %p89_p3  ;;  %p229_p10 = scmp.eq.s32.totalorder %s1405_s9, 1 }
  0x1d   : > { %p2004_p9 = por %p223_p6, %p83_p1  ;;  %p1547_p13 = scmp.lt.s32.totalorder %s1891_s0, 2 }
  0x1e   : > { %s2457_s14 = scalar_select %p2000_p8, 1, 0 }
  0x1f   : > { %s2458_s15 = scalar_select %p2004_p9, 1, 0 }
  0x20   : > { %s2009_s16 = scalar_select %p74_p7, %s1879_s28, %s76_s11  }
  0x21   : > { %p2011_p11 = por %p229_p10, %p89_p3  ;;  %s2018_s18 = sand.u32 1, %s1879_s28  }
  0x22   : > { %2459 = sst [smem:[#allocation24_spill]] %s2009_s16  ;;  %s2021_s19 = sshll.u32 %s2018_s18, 5 }
  0x23   : > { %s2460_s17 = scalar_select %p2011_p11, 1, 0 }
  0x24   : > { %s2024_s20 = sshll.u32 %s1887_s30, 9  ;;  %p2028_p0 = pnand %p1547_p13, %p1992_p4 }
  0x25   : > { %2461 = sst [smem:[#allocation25_spill]] %s2460_s17  ;;  %s2433_s22 = sand.u32 1, %s1891_s0  }
  0x26   : > { %s2462_s21 = scalar_select %p2028_p0, 1, 0 }
  0x27   : > { %s2463_s2 = sld [smem:[#allocation27_spill]]  ;;  %s306_s9 = scalar_lea.vmem [#allocation6], %s2021_s19 }
  0x28   : > { %s313_s11 = sshll.u32 %s306_s9, 4  ;;  %s2046_s12 = scalar_lea.sflag [#allocation7], %s2433_s22  ;;  %s2041_s11 = int_to_ptr.vmem [resolvable:$true] %s313_s11 }
  0x29   : > { %p2052_p4 = pneg %p2028_p0 }
  0x2d   : > { %s2037_s25 = scalar_lea.hbm %s2463_s2, %s2024_s20  ;;  %s1624_s10 = scalar_lea.hbm %s2463_s2, 1024 }
  0x2e   : > { %s1619_s13 = scalar_lea.hbm %s2037_s25, 512  ;;  %p1625_p7 = scmp.lt.u32.totalorder %s2037_s25, %s2463_s2 }
  0x2f   : > { %p1620_p3 = scmp.ne.s32.totalorder %s2037_s25, %s1619_s13  ;;  %p1626_p10 = scmp.lt.u32.totalorder %s1624_s10, %s1619_s13 }
  0x30   : > { %p1628_p12 = scmp.lt.u32.totalorder %s1619_s13, %s2037_s25 }
  0x31   : > { %p1622_p5 = pnand %p2052_p4, %p1620_p3  ;;  %p1627_p13 = por %p1626_p10, %p1625_p7 }
  0x33   : > { %p1623_p6 = pneg %p1622_p5  ;;  %p1629_p1 = por %p1628_p12, %p1627_p13 }
  0x35   : > { %p1630_p2 = pnand %p1629_p1, %p1623_p6 }
  0x37   : > { %1633 = shalt.err (!%p1630_p2)
}
  0x38   : > { %s1634_s22 = scalar_lea.vmem %s2041_s11, 512  ;;  %s1893_s24 = smov [#allocation6]  }
  0x39   : > { %p1635_p3 = scmp.ne.s32.totalorder %s2041_s11, %s1634_s22  ;;  %s1639_s9 = sshll.u32 %s1893_s24, 4  ;;  %s1640_s9 = int_to_ptr.vmem [resolvable:$false] %s1639_s9 }
  0x3a   : > { %s1641_s28 = scalar_lea.vmem %s1640_s9, 1024  ;;  %p1642_p9 = scmp.lt.s32.totalorder %s2041_s11, %s1640_s9 }
  0x3b   : > { %p1637_p5 = pnand %p1635_p3, %p2052_p4  ;;  %p1643_p8 = scmp.lt.s32.totalorder %s1641_s28, %s1634_s22 }
  0x3d   : > { %p1638_p11 = pneg %p1637_p5  ;;  %p1644_p7 = por %p1643_p8, %p1642_p9 }
  0x3f   : > { %p1645_p10 = pnand %p1644_p7, %p1638_p11 }
  0x41   : > { %1648 = shalt.err (!%p1645_p10)
}
  0x42   : > { %s2437_s10 = smov 128   ;;  %s2439_s16 = smov 8  }
  0x43   : > { %1530 = dma.hbm_to_vmem [thread:$0]  (!%p2028_p0), %s2037_s25, 512, %s2041_s11, %s2046_s12, %s2437_s10, %s2437_s10, %s2439_s16  }
  0x44   : > { %p2465_p8 = scmp.lt.s32.totalorder %s1891_s0, 3  ;;  %p2466_p9 = scmp.ge.s32.totalorder %s1891_s0, 1 }
  0x45   : > { %s2444_s13 = sshll.u32 %s2018_s18, 3  ;;  %s1418_s24 = sshll.u32 %s1887_s30, 7 }
  0x46   : > { %p2083_p11 = pnand %p2466_p9, %p2465_p8  ;;  %s2468_s4 = sld [smem:[#allocation28_spill]] }
  0x47   : > { %s348_s17 = scalar_lea.vmem [#allocation9], %s2444_s13  ;;  %s2101_s16 = scalar_lea.hbm %s2428_s5, %s1418_s24 }
  0x48   : > { %s2467_s22 = scalar_select %p2083_p11, 1, 0 }
  0x49   : > { %s356_s25 = sshll.u32 %s348_s17, 4  ;;  %s2469_s30 = sand.u32 1, %s1891_s0   ;;  %s2096_s25 = int_to_ptr.vmem [resolvable:$true] %s356_s25 }
  0x4a   : > { %s2105_s26 = scalar_lea.sflag [#allocation10], %s2469_s30 }
  0x4c   : > { %s2092_s2 = scalar_lea.hbm %s2468_s4, %s1418_s24  ;;  %s1654_s13 = scalar_lea.hbm %s2468_s4, 256 }
  0x4d   : > { %s1649_s9 = scalar_lea.hbm %s2092_s2, 128  ;;  %p1655_p6 = scmp.lt.u32.totalorder %s2092_s2, %s2468_s4 }
  0x4e   : > { %p1650_p12 = scmp.ne.s32.totalorder %s2092_s2, %s1649_s9  ;;  %p1656_p13 = scmp.lt.u32.totalorder %s1654_s13, %s1649_s9 }
  0x4f   : > { %p1658_p5 = scmp.lt.u32.totalorder %s1649_s9, %s2092_s2 }
  0x50   : > { %p1652_p1 = pnand %p1650_p12, %p2052_p4  ;;  %p1657_p3 = por %p1656_p13, %p1655_p6 }
  0x52   : > { %p1653_p2 = pneg %p1652_p1  ;;  %p1659_p7 = por %p1658_p5, %p1657_p3 }
  0x54   : > { %p1660_p10 = pnand %p1659_p7, %p1653_p2 }
  0x56   : > { %1663 = shalt.err (!%p1660_p10)
}
  0x57   : > { %s1664_s30 = scalar_lea.vmem %s2096_s25, 128  ;;  %s1896_s6 = smov [#allocation9]  }
  0x58   : > { %p1665_p8 = scmp.ne.s32.totalorder %s2096_s25, %s1664_s30  ;;  %s1669_s10 = sshll.u32 %s1896_s6, 4  ;;  %s1670_s10 = int_to_ptr.vmem [resolvable:$false] %s1669_s10 }
  0x59   : > { %s1671_s7 = scalar_lea.vmem %s1670_s10, 256  ;;  %p1672_p1 = scmp.lt.s32.totalorder %s2096_s25, %s1670_s10 }
  0x5a   : > { %p1667_p9 = pnand %p1665_p8, %p2052_p4  ;;  %p1673_p11 = scmp.lt.s32.totalorder %s1671_s7, %s1664_s30 }
  0x5c   : > { %p1668_p12 = pneg %p1667_p9  ;;  %p1674_p6 = por %p1673_p11, %p1672_p1 }
  0x5e   : > { %p1675_p13 = pnand %p1674_p6, %p1668_p12 }
  0x60   : > { %1678 = shalt.err (!%p1675_p13)
}
  0x61   : > { %1536 = dma.hbm_to_vmem [thread:$0]  (!%p2028_p0), %s2092_s2, 128, %s2096_s25, %s2105_s26  }
  0x62   : > { %s2470_s1 = sld [smem:[#allocation26_spill]]  ;;  %s284_s9 = scalar_lea.vmem [#allocation3], %s2021_s19 }
  0x63   : > { %s292_s28 = sshll.u32 %s284_s9, 4  ;;  %s281_s17 = scalar_lea.sflag [#allocation4], %s2018_s18  ;;  %s2136_s28 = int_to_ptr.vmem [resolvable:$true] %s292_s28 }
  0x68   : > { %s2133_s11 = scalar_lea.hbm %s2470_s1, %s2024_s20  ;;  %s1684_s6 = scalar_lea.hbm %s2470_s1, 1024 }
  0x69   : > { %s1679_s30 = scalar_lea.hbm %s2133_s11, 512  ;;  %p1685_p5 = scmp.lt.u32.totalorder %s2133_s11, %s2470_s1 }
  0x6a   : > { %p1680_p11 = scmp.ne.s32.totalorder %s2133_s11, %s1679_s30  ;;  %p1686_p7 = scmp.lt.u32.totalorder %s1684_s6, %s1679_s30 }
  0x6b   : > { %p1688_p8 = scmp.lt.u32.totalorder %s1679_s30, %s2133_s11 }
  0x6c   : > { %p1682_p2 = pnand %p1680_p11, %p2052_p4  ;;  %p1687_p10 = por %p1686_p7, %p1685_p5 }
  0x6e   : > { %p1683_p3 = pneg %p1682_p2  ;;  %p1689_p9 = por %p1688_p8, %p1687_p10 }
  0x70   : > { %p1690_p12 = pnand %p1689_p9, %p1683_p3 }
  0x72   : > { %1693 = shalt.err (!%p1690_p12)
}
  0x73   : > { %s1694_s13 = scalar_lea.vmem %s2136_s28, 512  ;;  %s1897_s24 = smov [#allocation3]  }
  0x74   : > { %p1695_p1 = scmp.ne.s32.totalorder %s2136_s28, %s1694_s13  ;;  %s1699_s9 = sshll.u32 %s1897_s24, 4  ;;  %s1700_s9 = int_to_ptr.vmem [resolvable:$false] %s1699_s9 }
  0x75   : > { %s1701_s2 = scalar_lea.vmem %s1700_s9, 1024  ;;  %p1702_p11 = scmp.lt.s32.totalorder %s2136_s28, %s1700_s9 }
  0x76   : > { %p1697_p6 = pnand %p1695_p1, %p2052_p4  ;;  %p1703_p2 = scmp.lt.s32.totalorder %s1701_s2, %s1694_s13 }
  0x78   : > { %p1698_p13 = pneg %p1697_p6  ;;  %p1704_p5 = por %p1703_p2, %p1702_p11 }
  0x7a   : > { %p1705_p7 = pnand %p1704_p5, %p1698_p13 }
  0x7c   : > { %1708 = shalt.err (!%p1705_p7)
}
  0x7d   : > { %s2471_s30 = smov 8   ;;  %s2472_s25 = smov 128  }
  0x7e   : > { %1527 = dma.hbm_to_vmem [thread:$0]  (!%p2028_p0), %s2133_s11, 512, %s2136_s28, %s281_s17, %s2472_s25, %s2472_s25, %s2471_s30  }
  0x7f   : > { %s2169_s7 = scalar_lea.hbm %s2426_s3, %s2024_s20  ;;  %s327_s13 = scalar_lea.vmem [#allocation8], %s2021_s19 }
  0x80   : > { %s334_s24 = sshll.u32 %s327_s13, 4  ;;  %s2473_s9 = sshll.u32 %s2018_s18, 3  ;;  %s2172_s24 = int_to_ptr.vmem [resolvable:$true] %s334_s24 }
  0x81   : > { %s2176_s2 = scalar_lea.vmem [#allocation11], %s2473_s9  ;;  %s1709_s4 = scalar_lea.hbm %s2169_s7, 512 }
  0x82   : > { %s375_s1 = sshll.u32 %s2176_s2, 4  ;;  %p1710_p3 = scmp.ne.s32.totalorder %s2169_s7, %s1709_s4  ;;  %s376_s1 = int_to_ptr.vmem [resolvable:$true] %s375_s1 }
  0x83   : > { %s1714_s28 = scalar_lea.hbm %s2426_s3, 1024  ;;  %p1715_p9 = scmp.lt.u32.totalorder %s2169_s7, %s2426_s3 }
  0x84   : > { %p1712_p10 = pnand %p1710_p3, %p2052_p4  ;;  %p1716_p12 = scmp.lt.u32.totalorder %s1714_s28, %s1709_s4 }
  0x85   : > { %p1718_p6 = scmp.lt.u32.totalorder %s1709_s4, %s2169_s7 }
  0x86   : > { %p1713_p8 = pneg %p1712_p10  ;;  %p1717_p1 = por %p1716_p12, %p1715_p9 }
  0x88   : > { %p1719_p13 = por %p1718_p6, %p1717_p1 }
  0x8a   : > { %p1720_p11 = pnand %p1719_p13, %p1713_p8 }
  0x8c   : > { %1723 = shalt.err (!%p1720_p11)
}
  0x8d   : > { %s1724_s18 = scalar_lea.vmem %s2172_s24, 512  ;;  %s1898_s19 = smov [#allocation8]  }
  0x8e   : > { %p1725_p2 = scmp.ne.s32.totalorder %s2172_s24, %s1724_s18  ;;  %s1729_s10 = sshll.u32 %s1898_s19, 4  ;;  %s1730_s10 = int_to_ptr.vmem [resolvable:$false] %s1729_s10 }
  0x8f   : > { %s1731_s13 = scalar_lea.vmem %s1730_s10, 1024  ;;  %p1732_p3 = scmp.lt.s32.totalorder %s2172_s24, %s1730_s10 }
  0x90   : > { %p1727_p5 = pnand %p1725_p2, %p2052_p4  ;;  %p1733_p10 = scmp.lt.s32.totalorder %s1731_s13, %s1724_s18 }
  0x92   : > { %p1728_p7 = pneg %p1727_p5  ;;  %p1734_p9 = por %p1733_p10, %p1732_p3 }
  0x94   : > { %p1735_p12 = pnand %p1734_p9, %p1728_p7 }
  0x96   : > { %1738 = shalt.err (!%p1735_p12)
}
  0x97   : > { %1533 = dma.hbm_to_vmem [thread:$0]  (!%p2028_p0), %s2169_s7, 512, %s2172_s24, %s2046_s12, %s2472_s25, %s2472_s25, %s2471_s30  }
  0x98   : > { %s1739_s4 = scalar_lea.hbm %s2101_s16, 128  ;;  %s1744_s11 = scalar_lea.hbm %s2428_s5, 256 }
  0x99   : > { %p1740_p8 = scmp.ne.s32.totalorder %s2101_s16, %s1739_s4  ;;  %p1745_p13 = scmp.lt.u32.totalorder %s2101_s16, %s2428_s5 }
  0x9a   : > { %p1746_p11 = scmp.lt.u32.totalorder %s1744_s11, %s1739_s4  ;;  %p1748_p5 = scmp.lt.u32.totalorder %s1739_s4, %s2101_s16 }
  0x9b   : > { %p1742_p1 = pnand %p1740_p8, %p2052_p4 }
  0x9c   : > { %p1747_p2 = por %p1746_p11, %p1745_p13 }
  0x9d   : > { %p1743_p6 = pneg %p1742_p1 }
  0x9e   : > { %p1749_p7 = por %p1748_p5, %p1747_p2 }
  0xa0   : > { %p1750_p3 = pnand %p1749_p7, %p1743_p6 }
  0xa2   : > { %1753 = shalt.err (!%p1750_p3)
}
  0xa3   : > { %s1754_s12 = scalar_lea.vmem %s376_s1, 128  ;;  %s1899_s30 = smov [#allocation11]  }
  0xa4   : > { %p1755_p10 = scmp.ne.s32.totalorder %s376_s1, %s1754_s12  ;;  %s1759_s25 = sshll.u32 %s1899_s30, 4  ;;  %s1760_s25 = int_to_ptr.vmem [resolvable:$false] %s1759_s25 }
  0xa5   : > { %s1761_s7 = scalar_lea.vmem %s1760_s25, 256  ;;  %p1762_p8 = scmp.lt.s32.totalorder %s376_s1, %s1760_s25 }
  0xa6   : > { %p1757_p9 = pnand %p1755_p10, %p2052_p4  ;;  %p1763_p1 = scmp.lt.s32.totalorder %s1761_s7, %s1754_s12 }
  0xa8   : > { %p1758_p12 = pneg %p1757_p9  ;;  %p1764_p0 = por %p1763_p1, %p1762_p8 }
  0xaa   : > { %p1765_p11 = pnand %p1764_p0, %p1758_p12 }
  0xac   : > { %1768 = shalt.err (!%p1765_p11)
}
  0xad   : > { %p2474_p13 = scmp.ne.s32.totalorder %s2462_s21, 0  ;;  %p2475_p6 = scmp.ne.s32.totalorder %s2467_s22, 0 }
  0xae   : > { %s2227_s23 = sand.u32 (!%p2475_p6), 1, %s1875_s27   ;;  %p2476_p0 = scmp.ne.s32.totalorder (!%p2475_p6), %s2457_s14, 0 }
  0xaf   : > { %1539 = dma.hbm_to_vmem [thread:$0]  (!%p2474_p13), %s2101_s16, 128, %s376_s1, %s2105_s26  }
  0xb0   : > { %384 = sbr.rel (%p2475_p6) target bundleno = 959 (0x3bf), region = 44  ;;  %s2230_s24 = sshll.u32 (!%p2475_p6), %s2227_s23, 5 }
  0xb1   : > { %s387_s2 = scalar_lea.sflag (!%p2475_p6), [#allocation4], %s2227_s23  ;;  %s2234_s6 = scalar_lea.vmem (!%p2475_p6), [#allocation3], %s2230_s24 }
  0xb7   : > { %1850 = dma.done.wait (%p2476_p0), %s387_s2, 512  }
  0xb8   : > { %1852 = vsyncadd (%p2476_p0), %s387_s2, 4294966784  ;;  %s395_s1 = sand.u32 1, %s1980_s8   ;;  %s399_s21 = scalar_lea.vmem [#allocation6], %s2230_s24 }
  0xb9   : > { %s396_s26 = scalar_lea.sflag [#allocation7], %s395_s1 }
  0xba   : > { %1854 = dma.done.wait (%p2476_p0), %s396_s26, 1024  }
  0xbb   : > { %1856 = vsyncadd (%p2476_p0), %s396_s26, 4294966272  ;;  %s1425_s16 = sshll.u32 %s2227_s23, 3  ;;  %s2248_s22 = scalar_lea.vmem [#allocation8], %s2230_s24 }
  0xbc   : > { %s414_s18 = scalar_lea.sflag [#allocation10], %s395_s1  ;;  %s2252_s19 = scalar_lea.vmem [#allocation9], %s1425_s16 }
  0xbd   : > { %1858 = dma.done.wait (%p2476_p0), %s414_s18, 256  }
  0xbe   : > { %1860 = vsyncadd (%p2476_p0), %s414_s18, 4294967040  ;;  %v1900_v0 = vmov 0.0   ;;  %vm1901_vm0 = vmmov 0   ;;  %vm503_vm1 = vcmask 261120   ;;  %v486_v1 = vld [vmem:[%s399_s21] sm:$0xff]  ;;  %v487_v3 = vld [vmem:[%s399_s21 + $0x8] sm:$0xff] }
  0xbf   : > { %1470 = vmatprep.subr.mxu0 %v1900_v0  ;;  %1472 = vmatprep.mubr.msk.f32.mxu0 %vm1901_vm0, %v1900_v0  ;;  %v482_v2 = vld [vmem:[%s2234_s6] sm:$0xff]  ;;  %v483_v5 = vld [vmem:[%s2234_s6 + $0x8] sm:$0xff]  ;;  %v484_v6 = vld [vmem:[%s2234_s6 + $0x10] sm:$0xff]  ;;  %s496_s8 = sld [smem:[#allocation2]]  ;;  %s426_s14 = scalar_lea.vmem [#allocation11], %s1425_s16  ;;  %vm815_vm3 = vcmask 64512  }
  0xc0   : > { %1475 = vmatprep.subr.mxu1 %v1900_v0  ;;  %1477 = vmatprep.mubr.msk.f32.mxu1 %vm1901_vm0, %v1900_v0  ;;  %v497_v4 = vmul.f32 0.17677669, %v482_v2  ;;  %v488_v7 = vld [vmem:[%s399_s21 + $0x10] sm:$0xff]  ;;  %v498_v8 = vmul.f32 0.17677669, %v483_v5  ;;  %v485_v9 = vld [vmem:[%s2234_s6 + $0x18] sm:$0xff] }
  0xc1   : > { %1471 = vmatpush3.xpose.msk.msra.mxu0 %vm503_vm1, %v486_v1  ;;  %1476 = vmatpush3.xpose.msk.msra.mxu1 %vm503_vm1, %v487_v3  ;;  %v489_v10 = vld [vmem:[%s399_s21 + $0x18] sm:$0xff]  ;;  %v499_v11 = vmul.f32 0.17677669, %v484_v6  ;;  %v500_v12 = vmul.f32 0.17677669, %v485_v9  ;;  %v494_v16 = vld [vmem:[%s2252_s19] sm:$0xff] }
  0xc2   : > { %1480 = vmatprep.subr.mxu0 %v1900_v0  ;;  %1485 = vmatprep.subr.mxu1 %v1900_v0  ;;  %v495_v13 = vld [vmem:[%s426_s14] sm:$0xff]  ;;  %vm808_vm2 = vcmp.eq.f32.partialorder %v494_v16, 0.0  ;;  %v490_v57 = vld [vmem:[%s2248_s22] sm:$0xff]  ;;  %v491_v58 = vld [vmem:[%s2248_s22 + $0x8] sm:$0xff]  ;;  %s481_s10 = scalar_lea.vmem [#allocation13], %s2230_s24  ;;  %s1452_s13 = sshll.u32 %s1883_s29, 9 }
  0xc3   : > { %v492_v2 = vld [vmem:[%s2248_s22 + $0x10] sm:$0xff]  ;;  %v493_v6 = vld [vmem:[%s2248_s22 + $0x18] sm:$0xff]  ;;  %s2477_s20 = sld [smem:[#allocation30_spill]]  ;;  %s1197_s28 = sshll.u32 %s481_s10, 4  ;;  %s2330_s28 = int_to_ptr.vmem [resolvable:$true] %s1197_s28 }
  0xc4   : > { %1473 = vmatmul.mubr.msk.f32.vlgmr.msra.gmra.mrb[0].mxu0 %vm503_vm1, %v497_v4  ;;  %1478 = vmatmul.mubr.msk.f32.vlgmr.msra.gmra.mrb[0].mxu1 %vm503_vm1, %v498_v8  ;;  %s1166_s17 = scalar_lea.sflag [#allocation14], %s2227_s23  ;;  %s1769_s12 = scalar_lea.vmem %s2330_s28, 512 }
  0xc5   : > { %1481 = vmatpush3.xpose.msk.msra.mxu0 %vm503_vm1, %v488_v7  ;;  %1482 = vmatprep.mubr.msk.f32.mxu0 %vm1901_vm0, %v1900_v0  ;;  %v501_v14 = vstv %s496_s8  ;;  %p1770_p4 = scmp.ne.s32.totalorder %s2330_s28, %s1769_s12  ;;  %p2478_p2 = scmp.ne.s32.totalorder %s2458_s15, 0 }
  0xc6   : > { %1486 = vmatpush3.xpose.msk.msra.mxu1 %vm503_vm1, %v489_v10  ;;  %1487 = vmatprep.mubr.msk.f32.mxu1 %vm1901_vm0, %v1900_v0  ;;  %v502_v15 = vmul.f32 %v501_v14, %v495_v13  ;;  %s1902_s30 = smov [#allocation13]  }
  0xc7   : > { %1490 = vmatprep.subr.mxu0 %v1900_v0  ;;  %1495 = vmatprep.subr.mxu1 %v1900_v0  ;;  %p1771_p5 = pnand %p1770_p4, %p2478_p2  ;;  %s1773_s25 = sshll.u32 %s1902_s30, 4  ;;  %s1774_s25 = int_to_ptr.vmem [resolvable:$false] %s1773_s25 }
  0xc8   : > { %1483 = vmatmul.mubr.msk.f32.vlgmr.msra.gmra.mrb[2].mxu0 %vm503_vm1, %v499_v11  ;;  %s1775_s7 = scalar_lea.vmem %s1774_s25, 1024  ;;  %p1776_p3 = scmp.lt.s32.totalorder %s2330_s28, %s1774_s25 }
  0xc9   : > { %1488 = vmatmul.mubr.msk.f32.vlgmr.msra.gmra.mrb[2].mxu1 %vm503_vm1, %v500_v12  ;;  %1492 = vmatprep.mubr.msk.f32.mxu0 %vm1901_vm0, %v1900_v0  ;;  %s2328_s11 = scalar_lea.hbm %s2477_s20, %s1452_s13  ;;  %p1772_p7 = pneg %p1771_p5 }
  0xca   : > { %1497 = vmatprep.mubr.msk.f32.mxu1 %vm1901_vm0, %v1900_v0  ;;  %1491 = vmatpush3.msra.mxu0 %v490_v57  ;;  %p1777_p10 = scmp.lt.s32.totalorder %s1775_s7, %s1769_s12 }
  0xcb   : > { %1500 = vmatprep.subr.mxu0 %v1900_v0  ;;  %1496 = vmatpush3.msra.mxu1 %v491_v58 }
  0xcc   : > { %1505 = vmatprep.subr.mxu1 %v1900_v0  ;;  %p1778_p9 = por %p1777_p10, %p1776_p3 }
  0xce   : > { %p1779_p12 = pnand %p1778_p9, %p1772_p7 }
 0x197   : > { %v576_v17 = vpop.f32.mrb[0].mxu0  ;;  %v652_v18 = vpop.f32.mrb[0].mxu1 }
 0x198   : > { %v577_v19 = vadd.f32 %v576_v17, %v502_v15  ;;  %v1474_v20 = vpop.f32.mrb[1].mxu0  ;;  %v653_v21 = vadd.f32 %v652_v18, %v502_v15  ;;  %v1479_v22 = vpop.f32.mrb[1].mxu1 }
 0x19a   : > { %v811_v23 = vsel %vm808_vm2, -inf, %v577_v19  ;;  %v812_v24 = vsel %vm808_vm2, -inf, %v653_v21 }
 0x19b   : > { %v728_v25 = vpop.f32.mrb[2].mxu0  ;;  %v816_v26 = vsel %vm815_vm3, %v811_v23, -inf  ;;  %v819_v32 = vsel %vm815_vm3, %v812_v24, -inf }
 0x19c   : > { %v729_v27 = vadd.f32 %v728_v25, %v502_v15  ;;  %817 = vmax.xlane.f32.xlu0 %v816_v26  ;;  %v1484_v28 = vpop.f32.mrb[3].mxu0  ;;  %v804_v29 = vpop.f32.mrb[2].mxu1 }
 0x19d   : > { %v805_v30 = vadd.f32 %v804_v29, %v502_v15  ;;  %v1489_v31 = vpop.f32.mrb[3].mxu1 }
 0x19e   : > { %v813_v33 = vsel %vm808_vm2, -inf, %v729_v27 }
 0x19f   : > { %v822_v34 = vsel %vm815_vm3, %v813_v33, -inf  ;;  %v814_v35 = vsel %vm808_vm2, -inf, %v805_v30 }
 0x1a0   : > { %820 = vmax.xlane.f32.xlu0 %v819_v32  ;;  %823 = vmax.xlane.f32.xlu1 %v822_v34  ;;  %v825_v36 = vsel %vm815_vm3, %v814_v35, -inf }
 0x1a4   : > { %826 = vmax.xlane.f32.xlu1 %v825_v36 }
 0x229   : > { %v818_v37 = vpop.xlane.xlu0 %817 }
 0x22a   : > { %v828_v38 = vsub.f32 %v811_v23, %v818_v37 }
 0x22c   : > { %v832_v39 = vmul.f32 1.442695, %v828_v38 }
 0x22d   : > { %v821_v40 = vpop.xlane.xlu0 %820  ;;  %v824_v41 = vpop.xlane.xlu1 %823 }
 0x22e   : > { %1603 = vpow2.f32 %v832_v39  ;;  %v829_v42 = vsub.f32 %v812_v24, %v821_v40  ;;  %v830_v43 = vsub.f32 %v813_v33, %v824_v41 }
 0x230   : > { %v834_v44 = vmul.f32 1.442695, %v829_v42  ;;  %v836_v45 = vmul.f32 1.442695, %v830_v43 }
 0x231   : > { %v827_v46 = vpop.xlane.xlu1 %826 }
 0x232   : > { %1605 = vpow2.f32 %v834_v44  ;;  %v831_v47 = vsub.f32 %v814_v35, %v827_v46 }
 0x233   : > { %1607 = vpow2.f32 %v836_v45 }
 0x234   : > { %v838_v48 = vmul.f32 1.442695, %v831_v47 }
 0x236   : > { %1609 = vpow2.f32 %v838_v48 }
 0x238   : > { %v1604_v49 = vpop.eup %1603 }
 0x239   : > { %v840_v50 = vsel %vm815_vm3, %v1604_v49, 0.0 }
 0x23a   : > { %841 = vadd.xlane.f32.xlu0 %v840_v50 }
 0x23c   : > { %v1606_v51 = vpop.eup %1605 }
 0x23d   : > { %v1608_v52 = vpop.eup %1607  ;;  %v843_v53 = vsel %vm815_vm3, %v1606_v51, 0.0 }
 0x23e   : > { %844 = vadd.xlane.f32.xlu1 %v843_v53  ;;  %v846_v54 = vsel %vm815_vm3, %v1608_v52, 0.0 }
 0x23f   : > { %847 = vadd.xlane.f32.xlu0 %v846_v54 }
 0x240   : > { %v1610_v55 = vpop.eup %1609 }
 0x241   : > { %v849_v56 = vsel %vm815_vm3, %v1610_v55, 0.0 }
 0x242   : > { %850 = vadd.xlane.f32.xlu1 %v849_v56 }
 0x2c7   : > { %v842_v59 = vpop.xlane.xlu0 %841 }
 0x2c8   : > { %1611 = vrcp.f32 %v842_v59 }
 0x2cb   : > { %v845_v60 = vpop.xlane.xlu1 %844 }
 0x2cc   : > { %v848_v61 = vpop.xlane.xlu0 %847  ;;  %1613 = vrcp.f32 %v845_v60 }
 0x2cd   : > { %1615 = vrcp.f32 %v848_v61 }
 0x2cf   : > { %v851_v62 = vpop.xlane.xlu1 %850 }
 0x2d0   : > { %1617 = vrcp.f32 %v851_v62 }
 0x2d2   : > { %v1612_v63 = vpop.eup %1611 }
 0x2d3   : > { %v856_v1 = vmul.f32 %v1612_v63, %v1604_v49 }
 0x2d5   : > { %860 = vst.msk [vmem:[%s481_s10] sm:$0xff] %vm815_vm3, %v856_v1  ;;  %1493 = vmatmul.mubr.msk.f32.vlgmr.msra.gmra.mrb[4].mxu0 %vm815_vm3, %v856_v1 }
 0x2d6   : > { %v1614_v3 = vpop.eup %1613  ;;  %1501 = vmatpush3.msra.mxu0 %v492_v2  ;;  %1502 = vmatprep.mubr.msk.f32.mxu0 %vm1901_vm0, %v1900_v0 }
 0x2d7   : > { %v1616_v4 = vpop.eup %1615  ;;  %v857_v5 = vmul.f32 %v1614_v3, %v1606_v51 }
 0x2d8   : > { %v858_v7 = vmul.f32 %v1616_v4, %v1608_v52 }
 0x2d9   : > { %861 = vst.msk [vmem:[%s481_s10 + $0x8] sm:$0xff] %vm815_vm3, %v857_v5  ;;  %1498 = vmatmul.mubr.msk.f32.vlgmr.msra.gmra.mrb[4].mxu1 %vm815_vm3, %v857_v5 }
 0x2da   : > { %v1618_v8 = vpop.eup %1617  ;;  %862 = vst.msk [vmem:[%s481_s10 + $0x10] sm:$0xff] %vm815_vm3, %v858_v7  ;;  %1503 = vmatmul.mubr.msk.f32.vlgmr.msra.gmra.mrb[6].mxu0 %vm815_vm3, %v858_v7  ;;  %1506 = vmatpush3.msra.mxu1 %v493_v6 }
 0x2db   : > { %v859_v9 = vmul.f32 %v1618_v8, %v1610_v55  ;;  %1507 = vmatprep.mubr.msk.f32.mxu1 %vm1901_vm0, %v1900_v0 }
 0x2dd   : > { %863 = vst.msk [vmem:[%s481_s10 + $0x18] sm:$0xff] %vm815_vm3, %v859_v9  ;;  %1508 = vmatmul.mubr.msk.f32.vlgmr.msra.gmra.mrb[6].mxu1 %vm815_vm3, %v859_v9 }
 0x2de   : > { %1782 = shalt.err (!%p1779_p12)
}
 0x2df   : > { %s1783_s2 = scalar_lea.hbm %s2328_s11, 512  ;;  %s1787_s26 = scalar_lea.hbm %s2477_s20, 1024 }
 0x2e0   : > { %p1784_p8 = scmp.ne.s32.totalorder %s2328_s11, %s1783_s2  ;;  %p1788_p13 = scmp.lt.u32.totalorder %s2328_s11, %s2477_s20 }
 0x2e1   : > { %p1789_p6 = scmp.lt.u32.totalorder %s1787_s26, %s1783_s2  ;;  %p1791_p4 = scmp.lt.u32.totalorder %s1783_s2, %s2328_s11 }
 0x2e2   : > { %p1785_p1 = pnand %p1784_p8, %p2478_p2 }
 0x2e3   : > { %p1790_p0 = por %p1789_p6, %p1788_p13 }
 0x2e4   : > { %p1786_p11 = pneg %p1785_p1 }
 0x2e5   : > { %p1792_p5 = por %p1791_p4, %p1790_p0 }
 0x2e7   : > { %p1793_p7 = pnand %p1792_p5, %p1786_p11 }
 0x2e9   : > { %1796 = shalt.err (!%p1793_p7)
}
 0x2ea   : > { %s1903_s22 = smov 128   ;;  %s1904_s18 = smov 8  }
 0x2eb   : > { %1521 = dma.vmem_to_hbm [thread:$0]  (%p2478_p2), %s2330_s28, 512, %s2328_s11, %s1166_s17, %s1903_s22, %s1903_s22, %s1904_s18  }
 0x2ec   : > { %s474_s19 = scalar_lea.vmem [#allocation12], %s2230_s24  ;;  %s2479_s10 = sld [smem:[#allocation29_spill]] }
 0x2ed   : > { %s1180_s8 = sshll.u32 %s474_s19, 4  ;;  %s1161_s9 = scalar_lea.sflag [#allocation5], %s2227_s23  ;;  %s2362_s8 = int_to_ptr.vmem [resolvable:$true] %s1180_s8 }
 0x2ee   : > { %s1797_s11 = scalar_lea.vmem %s2362_s8, 512  ;;  %s1905_s28 = smov [#allocation12]  }
 0x2ef   : > { %p1798_p3 = scmp.ne.s32.totalorder %s2362_s8, %s1797_s11  ;;  %s1801_s17 = sshll.u32 %s1905_s28, 4  ;;  %s1802_s17 = int_to_ptr.vmem [resolvable:$false] %s1801_s17 }
 0x2f0   : > { %s1803_s12 = scalar_lea.vmem %s1802_s17, 1024  ;;  %p1804_p12 = scmp.lt.s32.totalorder %s2362_s8, %s1802_s17 }
 0x2f1   : > { %p1799_p10 = pnand %p1798_p3, %p2478_p2  ;;  %p1805_p8 = scmp.lt.s32.totalorder %s1803_s12, %s1797_s11 }
 0x2f2   : > { %s2370_s4 = scalar_lea.hbm %s2479_s10, %s1452_s13 }
 0x2f3   : > { %p1800_p9 = pneg %p1799_p10  ;;  %p1806_p1 = por %p1805_p8, %p1804_p12 }
 0x2f5   : > { %p1807_p11 = pnand %p1806_p1, %p1800_p9 }
 0x3a8   : > { %v933_v0 = vpop.f32.mrb[4].mxu0 }
 0x3a9   : > { %1156 = vst.msk [vmem:[%s474_s19] sm:$0xff] %vm503_vm1, %v933_v0  ;;  %v1494_v10 = vpop.f32.mrb[5].mxu0 }
 0x3ac   : > { %v1006_v11 = vpop.f32.mrb[4].mxu1 }
 0x3ad   : > { %1157 = vst.msk [vmem:[%s474_s19 + $0x8] sm:$0xff] %vm503_vm1, %v1006_v11  ;;  %v1079_v12 = vpop.f32.mrb[6].mxu0  ;;  %v1499_v13 = vpop.f32.mrb[5].mxu1 }
 0x3ae   : > { %1158 = vst.msk [vmem:[%s474_s19 + $0x10] sm:$0xff] %vm503_vm1, %v1079_v12  ;;  %v1504_v14 = vpop.f32.mrb[7].mxu0 }
 0x3b0   : > { %v1152_v15 = vpop.f32.mrb[6].mxu1 }
 0x3b1   : > { %1159 = vst.msk [vmem:[%s474_s19 + $0x18] sm:$0xff] %vm503_vm1, %v1152_v15  ;;  %v1509_v16 = vpop.f32.mrb[7].mxu1 }
 0x3b2   : > { %1810 = shalt.err (!%p1807_p11)
}
 0x3b3   : > { %s1811_s29 = scalar_lea.hbm %s2370_s4, 512  ;;  %s1815_s25 = scalar_lea.hbm %s2479_s10, 1024 }
 0x3b4   : > { %p1812_p13 = scmp.ne.s32.totalorder %s2370_s4, %s1811_s29  ;;  %p1816_p4 = scmp.lt.u32.totalorder %s2370_s4, %s2479_s10 }
 0x3b5   : > { %p1817_p5 = scmp.lt.u32.totalorder %s1815_s25, %s1811_s29  ;;  %p1819_p3 = scmp.lt.u32.totalorder %s1811_s29, %s2370_s4 }
 0x3b6   : > { %p1813_p6 = pnand %p1812_p13, %p2478_p2 }
 0x3b7   : > { %p1818_p7 = por %p1817_p5, %p1816_p4 }
 0x3b8   : > { %p1814_p0 = pneg %p1813_p6 }
 0x3b9   : > { %p1820_p10 = por %p1819_p3, %p1818_p7 }
 0x3bb   : > { %p1821_p9 = pnand %p1820_p10, %p1814_p0 }
 0x3bd   : > { %1824 = shalt.err (!%p1821_p9)
}
 0x3be   : > { %1520 = dma.vmem_to_hbm [thread:$0]  (%p2478_p2), %s2362_s8, 512, %s2370_s4, %s1161_s9, %s1903_s22, %s1903_s22, %s1904_s18  }
 0x3bf PF: > { %s2480_s6 = sld [smem:[#allocation20_spill]]  ;;  %s2481_s1 = sld [smem:[#allocation25_spill]] }
 0x3c0   : > { %p2483_p8 = scmp.ge.s32.totalorder %s1891_s0, 2 }
 0x3c5   : > { %s1212_s26 = sand.u32 1, %s2480_s6   ;;  %p2482_p12 = scmp.ne.s32.totalorder %s2481_s1, 0 }
 0x3c6   : > { %s1213_s21 = scalar_lea.sflag [#allocation5], %s1212_s26 }
 0x3c7   : > { %p1541_p1 = pnand %p2483_p8, %p2482_p12 }
 0x3c9   : > { %1862 = dma.done.wait (!%p1541_p1), %s1213_s21, 512  }
 0x3ca   : > { %1864 = vsyncadd (!%p1541_p1), %s1213_s21, 4294966784  ;;  %s1222_s15 = scalar_lea.sflag [#allocation14], %s1212_s26 }
 0x3cb   : > { %1866 = dma.done.wait (!%p1541_p1), %s1222_s15, 512  }
 0x3cc   : > { %1868 = vsyncadd (!%p1541_p1), %s1222_s15, 4294966784  ;;  %s34_s0 = sadd.s32 1, %s1891_s0   ;;  %s2484_s23 = sld [smem:[#allocation21_spill]] }
 0x3cd   : > { %p31_p11 = scmp.ge.s32.totalorder %s34_s0, 4   ;;  %s2485_s28 = sld [smem:[#allocation24_spill]] }
 0x3ce   : > { %s2486_s29 = sld [smem:[#allocation22_spill]]  ;;  %s2487_s30 = sld [smem:[#allocation23_spill]] }
 0x3cf   : > { %s2488_s26 = smov %s1875_s27  ;;  %33 = sbr.rel (!%p31_p11) target bundleno = 19 (0x13), region = 154 }
 0x3d2   : > { %s2489_s27 = smov %s2484_s23 }
 0x3d6   :  { %1227 = vsyncpa [#allocation4], 1 }
 0x3d7   :  { %1229 = vsyncpa [#allocation4 + $0x1], 1 }
 0x3d8   :  { %1230 = vsyncpa [#allocation7], 1 }
 0x3d9   :  { %1232 = vsyncpa [#allocation7 + $0x1], 1 }
 0x3da   :  { %1233 = vsyncpa [#allocation10], 1 }
 0x3db   :  { %1235 = vsyncpa [#allocation10 + $0x1], 1 }
 0x3dc   :  { %1236 = vsyncpa [#allocation5], 1 }
 0x3dd   :  { %1238 = vsyncpa [#allocation5 + $0x1], 1 }
 0x3de   :  { %1239 = vsyncpa [#allocation14], 1 }
 0x3df   :  { %1241 = vsyncpa [#allocation14 + $0x1], 1 }

</bundles_post_ra>
